<compile_context>
chip_gen: v7x
topology: tpu7x:2x2x1
jax: 0.10.0
libtpu: 0.0.40
codegen_flags: <defaults>
</compile_context>

<pallas_src>
import functools

import jax
import jax.numpy as jnp
from jax.experimental import pallas as pl
from jax.experimental.pallas import tpu as pltpu


def _complex_linear_kernel(x_ref, w_ref, p_ref, o_ref, *,
                           bf16_matmul: bool, lane_dense_out: bool):
    # x_ref: (tb, d_in)      streamed batch tile (double-buffered by Pallas)
    # w_ref: (d_in, d_out)   resident weights (constant index_map)
    # p_ref: (4, d_out)      rows = [real_bias, imag_bias, lambda_k1, lambda_k2]
    # o_ref: (1, tb) if lane_dense_out else (tb, 1)
    x = x_ref[...]
    if bf16_matmul:
        # W arrives already bf16 (cast once in the wrapper); only the streamed
        # x tile is cast here. Accumulate f32, elementwise tail f32.
        x = x.astype(jnp.bfloat16)
    w = w_ref[...]

    rb = p_ref[0:1, :]   # (1, d_out) -> broadcasts over batch rows
    ib = p_ref[1:2, :]
    l1 = p_ref[2:3, :]
    l2 = p_ref[3:4, :]

    # real_1 = x @ W + real_bias            (MXU, f32 accumulation)
    real_1 = jnp.dot(x, w, preferred_element_type=jnp.float32) + rb

    # denom = real_1^2 + imag_bias^2        (no epsilon guard -- faithful to
    # the PyTorch module: real_1 ~ 0 and imag_bias ~ 0 together -> inf/NaN)
    denom = real_1 * real_1 + ib * ib

    # out = (real_1*l1 + ib*l2) / denom.
    # Divide = EUP reciprocal seed + one Newton-Raphson step (~1e-7 rel err).
    num = real_1 * l1 + ib * l2
    r = pl.reciprocal(denom, approx=True)
    r = r * (2.0 - denom * r)
    out = num * r

    # Mean over output_dim.
    m = jnp.mean(out, axis=-1, keepdims=True)            # (tb, 1)
    if lane_dense_out:
        # Lane-dense (1, tb) store: tb/128 unmasked vst instead of tb/8 masked
        # vst.msk -- the vst slot is the scarcest (1 slot on v5e).
        o_ref[...] = jnp.transpose(m)
    else:
        o_ref[...] = m


def _pick_batch_tile(B: int, d_in: int, d_out: int):
    """Byte-based batch-tile sizing (review: size by bytes, not rows).

    Targets ~2 MiB of streamed x per tile (so the ~0.35 us per-grid-step
    overhead is negligible) while keeping ~4 live (tb, d_out) f32 tail
    intermediates within a modest VMEM budget. tb is a multiple of 128 when
    the grid has more than one step so the lane-dense (1, tb) output block is
    layout-legal.
    """
    by_x = (2 << 20) // (4 * max(d_in, 1))             # ~2 MiB x tile
    by_tail = (8 << 20) // (4 * 4 * max(d_out, 1))     # ~4 live f32 (tb, d_out)
    tb = max(128, (min(by_x, by_tail) // 128) * 128)
    if tb >= B:
        return B, 1                                     # single full-batch tile
    return tb, pl.cdiv(B, tb)


def _make_call(d_in, d_out, tb, num_tiles, *,
               bf16_matmul, lane_dense_out, single_buffer_resident):
    kernel = functools.partial(_complex_linear_kernel,
                               bf16_matmul=bf16_matmul,
                               lane_dense_out=lane_dense_out)

    resident_kwargs = {}
    if single_buffer_resident:
        # Constant-index inputs don't need Pallas' default double buffer;
        # halving their VMEM footprint buys a bigger x tile (v7x: 64 MiB VMEM).
        resident_kwargs = dict(pipeline_mode=pl.Buffered(1))

    in_specs = [
        # x: one (tb, d_in) tile per step (double-buffered / pipelined).
        pl.BlockSpec((tb, d_in), lambda i: (i, 0)),
        # W: same block every step -> stays VMEM-resident.
        pl.BlockSpec((d_in, d_out), lambda i: (0, 0), **resident_kwargs),
        # merged params slab: resident.
        pl.BlockSpec((4, d_out), lambda i: (0, 0), **resident_kwargs),
    ]
    if lane_dense_out:
        out_shape = jax.ShapeDtypeStruct((1, num_tiles * tb), jnp.float32)
        out_spec = pl.BlockSpec((1, tb), lambda i: (0, i))
    else:
        out_shape = jax.ShapeDtypeStruct((num_tiles * tb, 1), jnp.float32)
        out_spec = pl.BlockSpec((tb, 1), lambda i: (i, 0))

    return pl.pallas_call(
        kernel,
        out_shape=out_shape,
        grid=(num_tiles,),
        in_specs=in_specs,
        out_specs=out_spec,
        compiler_params=pltpu.CompilerParams(
            # Independent batch tiles -> shard across TCs on v7x megacore.
            dimension_semantics=("parallel",),
            # Explicit budget below v7x's 64 MiB VMEM (32 MiB scoped default);
            # also valid on v5e/v6e (128 MiB).
            vmem_limit_bytes=48 * 1024 * 1024,
        ),
    )


def complex_linear(x, real_weights, real_bias, imag_bias, lambda_k1, lambda_k2,
                   *, bf16_matmul: bool = False):
    """Forward pass of ComplexLinear for real-valued x.

    x: (B, input_dim) float32. Returns (B, 1) float32.
    """
    B, d_in = x.shape
    d_out = real_weights.shape[1]

    x = x.astype(jnp.float32)
    # Optional bf16 matmul operands: cast W ONCE here (not per grid step in
    # the kernel); also halves resident W VMEM. Accumulation stays f32.
    # NOTE: bf16 operands are a production accuracy decision -- the 1e-5
    # self-check below runs the f32 path.
    w = real_weights.astype(jnp.bfloat16 if bf16_matmul else jnp.float32)
    # Merge the 4 per-output-dim parameter vectors into one (4, d_out) slab
    # -> one resident input / one DMA instead of four.
    params = jnp.stack([real_bias, imag_bias, lambda_k1, lambda_k2],
                       axis=0).astype(jnp.float32)

    tb, num_tiles = _pick_batch_tile(B, d_in, d_out)

    # TODO(synk): for very large d_out/d_in (e.g. 4096x4096 f32 W = 64 MiB,
    # which exceeds v7x VMEM) add an inner "arbitrary" grid axis over d_out
    # (and K) with a partial-sum scratch for the mean instead of a resident W.

    # Try the fully optimized configuration first; fall back to progressively
    # more conservative layouts if this Mosaic build rejects one of the newer
    # features (single-buffered resident specs / lane-dense relayout). The
    # last configuration matches the previously-proven-clean layout.
    configs = (
        dict(lane_dense_out=True, single_buffer_resident=True),
        dict(lane_dense_out=True, single_buffer_resident=False),
        dict(lane_dense_out=False, single_buffer_resident=False),
    )
    last_err = None
    for cfg in configs:
        try:
            call = _make_call(d_in, d_out, tb, num_tiles,
                              bf16_matmul=bf16_matmul, **cfg)
            out = call(x, w, params)
        except Exception as e:  # lowering/compile rejection -> next config
            last_err = e
            continue
        if cfg["lane_dense_out"]:
            return out[0, :B].reshape(B, 1)
        return out[:B]
    raise last_err


def reference(x, real_weights, real_bias, imag_bias, lambda_k1, lambda_k2):
    real_1 = x @ real_weights + real_bias
    denom = real_1 ** 2 + imag_bias ** 2
    out = (real_1 / denom) * lambda_k1 + (imag_bias / denom) * lambda_k2
    return jnp.mean(out, axis=-1).reshape(-1, 1)


if __name__ == "__main__":
    key = jax.random.PRNGKey(0)
    B, input_dim, output_dim = 8, 32, 32
    k_x, k_w, k_rb, k_ib, k_l1, k_l2 = jax.random.split(key, 6)

    # Deterministic inputs matching the PyTorch __init__ distributions.
    x = jax.random.normal(k_x, (B, input_dim), dtype=jnp.float32)
    real_weights = jax.random.normal(k_w, (input_dim, output_dim), jnp.float32) * 0.01
    real_bias = jax.random.normal(k_rb, (output_dim,), jnp.float32) * 0.001 + 0.01
    imag_bias = jax.random.normal(k_ib, (output_dim,), jnp.float32) * 0.001 - 0.1
    lambda_k1 = jax.random.normal(k_l1, (output_dim,), jnp.float32) * 0.01 + 0.05
    lambda_k2 = jax.random.normal(k_l2, (output_dim,), jnp.float32) * 0.01 + 0.05

    out = complex_linear(x, real_weights, real_bias, imag_bias,
                         lambda_k1, lambda_k2, bf16_matmul=False)
    out = jax.block_until_ready(out)

    ref = reference(x, real_weights, real_bias, imag_bias, lambda_k1, lambda_k2)
    assert out.shape == (B, 1), out.shape
    assert jnp.allclose(out, ref, atol=1e-5, rtol=1e-5), (out, ref)

    print("KERNEL_OK")
</pallas_src>

<mosaic_0001>
module attributes {stable_mosaic.version = 11 : i64} {
  func.func @_complex_linear_kernel(%arg0: i32, %arg1: memref<8x32xf32, #tpu.memory_space<vmem>>, %arg2: memref<32x32xf32, #tpu.memory_space<vmem>>, %arg3: memref<4x32xf32, #tpu.memory_space<vmem>>, %arg4: memref<1x8xf32, #tpu.memory_space<vmem>>) attributes {dimension_semantics = [#tpu.dimension_semantics<parallel>], iteration_bounds = array<i64: 1>, scalar_prefetch = 0 : i64, scratch_operands = 0 : i64, tpu.core_type = #tpu.core_type<tc>, window_params = [{transform_indices = @transform_0, window_bounds = array<i64: 8, 32>}, {pipeline_mode = #tpu.pipeline_mode<synchronous>, transform_indices = @transform_1, window_bounds = array<i64: 32, 32>}, {pipeline_mode = #tpu.pipeline_mode<synchronous>, transform_indices = @transform_2, window_bounds = array<i64: 4, 32>}, {transform_indices = @transform_3, window_bounds = array<i64: 1, 8>}]} {
    %c0 = arith.constant 0 : index
    %c0_0 = arith.constant 0 : index
    %0 = vector.load %arg1[%c0, %c0_0] : memref<8x32xf32, #tpu.memory_space<vmem>>, vector<8x32xf32>
    %c0_1 = arith.constant 0 : index
    %c0_2 = arith.constant 0 : index
    %1 = vector.load %arg2[%c0_1, %c0_2] : memref<32x32xf32, #tpu.memory_space<vmem>>, vector<32x32xf32>
    %c0_3 = arith.constant 0 : index
    %c0_4 = arith.constant 0 : index
    %2 = vector.load %arg3[%c0_3, %c0_4] : memref<4x32xf32, #tpu.memory_space<vmem>>, vector<1x32xf32>
    %c1 = arith.constant 1 : index
    %c0_5 = arith.constant 0 : index
    %3 = vector.load %arg3[%c1, %c0_5] : memref<4x32xf32, #tpu.memory_space<vmem>>, vector<1x32xf32>
    %c2 = arith.constant 2 : index
    %c0_6 = arith.constant 0 : index
    %4 = vector.load %arg3[%c2, %c0_6] : memref<4x32xf32, #tpu.memory_space<vmem>>, vector<1x32xf32>
    %c3 = arith.constant 3 : index
    %c0_7 = arith.constant 0 : index
    %5 = vector.load %arg3[%c3, %c0_7] : memref<4x32xf32, #tpu.memory_space<vmem>>, vector<1x32xf32>
    %cst = arith.constant dense<0.000000e+00> : vector<8x32xf32>
    %6 = tpu.matmul %0, %1, %cst {dimension_numbers = #tpu.dot_dimension_numbers<[1], [0], [0], [1], [0, 0, 1, 1], [], []>} : vector<8x32xf32>, vector<32x32xf32>, vector<8x32xf32> -> vector<8x32xf32>
    %7 = vector.broadcast %2 : vector<1x32xf32> to vector<8x32xf32>
    %8 = arith.addf %6, %7 : vector<8x32xf32>
    %9 = arith.mulf %8, %8 : vector<8x32xf32>
    %10 = arith.mulf %3, %3 : vector<1x32xf32>
    %11 = vector.broadcast %10 : vector<1x32xf32> to vector<8x32xf32>
    %12 = arith.addf %9, %11 : vector<8x32xf32>
    %13 = vector.broadcast %4 : vector<1x32xf32> to vector<8x32xf32>
    %14 = arith.mulf %8, %13 : vector<8x32xf32>
    %15 = arith.mulf %3, %5 : vector<1x32xf32>
    %16 = vector.broadcast %15 : vector<1x32xf32> to vector<8x32xf32>
    %17 = arith.addf %14, %16 : vector<8x32xf32>
    %18 = tpu.reciprocal %12 {approx = true} : vector<8x32xf32> -> vector<8x32xf32>
    %19 = arith.mulf %12, %18 : vector<8x32xf32>
    %cst_8 = arith.constant 2.000000e+00 : f32
    %20 = vector.broadcast %cst_8 : f32 to vector<8x32xf32>
    %21 = arith.subf %20, %19 : vector<8x32xf32>
    %22 = arith.mulf %18, %21 : vector<8x32xf32>
    %23 = arith.mulf %17, %22 : vector<8x32xf32>
    %cst_9 = arith.constant dense<0.000000e+00> : vector<8xf32>
    %24 = vector.multi_reduction <add>, %23, %cst_9 [1] : vector<8x32xf32> to vector<8xf32>
    %25 = vector.shape_cast %24 : vector<8xf32> to vector<8x1xf32>
    %cst_10 = arith.constant 3.200000e+01 : f32
    %26 = vector.broadcast %cst_10 : f32 to vector<8x1xf32>
    %27 = arith.divf %25, %26 : vector<8x1xf32>
    %28 = tpu.transpose %27, [1, 0] : vector<8x1xf32> -> vector<1x8xf32>
    %c0_11 = arith.constant 0 : index
    %c0_12 = arith.constant 0 : index
    %29 = vector.load %arg4[%c0_11, %c0_12] : memref<1x8xf32, #tpu.memory_space<vmem>>, vector<1x8xf32>
    tpu.vector_store %arg4[%c0_11, %c0_12], %28 {strides = array<i32>} : memref<1x8xf32, #tpu.memory_space<vmem>>, vector<1x8xf32>,
    return
  }
  func.func @transform_0(%arg0: i32) -> (i32, i32) {
    %c0_i32 = arith.constant 0 : i32
    %c0_i32_0 = arith.constant 0 : i32
    return %arg0, %c0_i32 : i32, i32
  }
  func.func @transform_1(%arg0: i32) -> (i32, i32) {
    %c0_i32 = arith.constant 0 : i32
    %c0_i32_0 = arith.constant 0 : i32
    %c0_i32_1 = arith.constant 0 : i32
    return %c0_i32, %c0_i32_0 : i32, i32
  }
  func.func @transform_2(%arg0: i32) -> (i32, i32) {
    %c0_i32 = arith.constant 0 : i32
    %c0_i32_0 = arith.constant 0 : i32
    %c0_i32_1 = arith.constant 0 : i32
    return %c0_i32, %c0_i32_0 : i32, i32
  }
  func.func @transform_3(%arg0: i32) -> (i32, i32) {
    %c0_i32 = arith.constant 0 : i32
    %c0_i32_0 = arith.constant 0 : i32
    return %c0_i32, %arg0 : i32, i32
  }
}

module attributes {stable_mosaic.version = 11 : i64} {
  func.func @_complex_linear_kernel(%arg0: i32, %arg1: memref<8x32xf32, #tpu.memory_space<vmem>>, %arg2: memref<32x32xf32, #tpu.memory_space<vmem>>, %arg3: memref<4x32xf32, #tpu.memory_space<vmem>>, %arg4: memref<1x8xf32, #tpu.memory_space<vmem>>) attributes {dimension_semantics = [#tpu.dimension_semantics<parallel>], iteration_bounds = array<i64: 1>, scalar_prefetch = 0 : i64, scratch_operands = 0 : i64, tpu.core_type = #tpu.core_type<tc>, window_params = [{transform_indices = @transform_0, window_bounds = array<i64: 8, 32>}, {pipeline_mode = #tpu.pipeline_mode<synchronous>, transform_indices = @transform_1, window_bounds = array<i64: 32, 32>}, {pipeline_mode = #tpu.pipeline_mode<synchronous>, transform_indices = @transform_2, window_bounds = array<i64: 4, 32>}, {transform_indices = @transform_3, window_bounds = array<i64: 1, 8>}]} {
    %c0 = arith.constant 0 : index
    %c0_0 = arith.constant 0 : index
    %0 = vector.load %arg1[%c0, %c0_0] : memref<8x32xf32, #tpu.memory_space<vmem>>, vector<8x32xf32>
    %c0_1 = arith.constant 0 : index
    %c0_2 = arith.constant 0 : index
    %1 = vector.load %arg2[%c0_1, %c0_2] : memref<32x32xf32, #tpu.memory_space<vmem>>, vector<32x32xf32>
    %c0_3 = arith.constant 0 : index
    %c0_4 = arith.constant 0 : index
    %2 = vector.load %arg3[%c0_3, %c0_4] : memref<4x32xf32, #tpu.memory_space<vmem>>, vector<1x32xf32>
    %c1 = arith.constant 1 : index
    %c0_5 = arith.constant 0 : index
    %3 = vector.load %arg3[%c1, %c0_5] : memref<4x32xf32, #tpu.memory_space<vmem>>, vector<1x32xf32>
    %c2 = arith.constant 2 : index
    %c0_6 = arith.constant 0 : index
    %4 = vector.load %arg3[%c2, %c0_6] : memref<4x32xf32, #tpu.memory_space<vmem>>, vector<1x32xf32>
    %c3 = arith.constant 3 : index
    %c0_7 = arith.constant 0 : index
    %5 = vector.load %arg3[%c3, %c0_7] : memref<4x32xf32, #tpu.memory_space<vmem>>, vector<1x32xf32>
    %cst = arith.constant dense<0.000000e+00> : vector<8x32xf32>
    %6 = tpu.matmul %0, %1, %cst {dimension_numbers = #tpu.dot_dimension_numbers<[1], [0], [0], [1], [0, 0, 1, 1], [], []>} : vector<8x32xf32>, vector<32x32xf32>, vector<8x32xf32> -> vector<8x32xf32>
    %7 = vector.broadcast %2 : vector<1x32xf32> to vector<8x32xf32>
    %8 = arith.addf %6, %7 : vector<8x32xf32>
    %9 = arith.mulf %8, %8 : vector<8x32xf32>
    %10 = arith.mulf %3, %3 : vector<1x32xf32>
    %11 = vector.broadcast %10 : vector<1x32xf32> to vector<8x32xf32>
    %12 = arith.addf %9, %11 : vector<8x32xf32>
    %13 = vector.broadcast %4 : vector<1x32xf32> to vector<8x32xf32>
    %14 = arith.mulf %8, %13 : vector<8x32xf32>
    %15 = arith.mulf %3, %5 : vector<1x32xf32>
    %16 = vector.broadcast %15 : vector<1x32xf32> to vector<8x32xf32>
    %17 = arith.addf %14, %16 : vector<8x32xf32>
    %18 = tpu.reciprocal %12 {approx = true} : vector<8x32xf32> -> vector<8x32xf32>
    %19 = arith.mulf %12, %18 : vector<8x32xf32>
    %cst_8 = arith.constant 2.000000e+00 : f32
    %20 = vector.broadcast %cst_8 : f32 to vector<8x32xf32>
    %21 = arith.subf %20, %19 : vector<8x32xf32>
    %22 = arith.mulf %18, %21 : vector<8x32xf32>
    %23 = arith.mulf %17, %22 : vector<8x32xf32>
    %cst_9 = arith.constant dense<0.000000e+00> : vector<8xf32>
    %24 = vector.multi_reduction <add>, %23, %cst_9 [1] : vector<8x32xf32> to vector<8xf32>
    %25 = vector.shape_cast %24 : vector<8xf32> to vector<8x1xf32>
    %cst_10 = arith.constant 3.200000e+01 : f32
    %26 = vector.broadcast %cst_10 : f32 to vector<8x1xf32>
    %27 = arith.divf %25, %26 : vector<8x1xf32>
    %28 = tpu.transpose %27, [1, 0] : vector<8x1xf32> -> vector<1x8xf32>
    %c0_11 = arith.constant 0 : index
    %c0_12 = arith.constant 0 : index
    %29 = vector.load %arg4[%c0_11, %c0_12] : memref<1x8xf32, #tpu.memory_space<vmem>>, vector<1x8xf32>
    tpu.vector_store %arg4[%c0_11, %c0_12], %28 {strides = array<i32>} : memref<1x8xf32, #tpu.memory_space<vmem>>, vector<1x8xf32>,
    return
  }
  func.func @transform_0(%arg0: i32) -> (i32, i32) {
    %c0_i32 = arith.constant 0 : i32
    %c0_i32_0 = arith.constant 0 : i32
    return %arg0, %c0_i32 : i32, i32
  }
  func.func @transform_1(%arg0: i32) -> (i32, i32) {
    %c0_i32 = arith.constant 0 : i32
    %c0_i32_0 = arith.constant 0 : i32
    %c0_i32_1 = arith.constant 0 : i32
    return %c0_i32, %c0_i32_0 : i32, i32
  }
  func.func @transform_2(%arg0: i32) -> (i32, i32) {
    %c0_i32 = arith.constant 0 : i32
    %c0_i32_0 = arith.constant 0 : i32
    %c0_i32_1 = arith.constant 0 : i32
    return %c0_i32, %c0_i32_0 : i32, i32
  }
  func.func @transform_3(%arg0: i32) -> (i32, i32) {
    %c0_i32 = arith.constant 0 : i32
    %c0_i32_0 = arith.constant 0 : i32
    return %c0_i32, %arg0 : i32, i32
  }
}

module attributes {stable_mosaic.version = 11 : i64} {
  func.func @_complex_linear_kernel(%arg0: i32, %arg1: memref<8x32xf32, #tpu.memory_space<vmem>>, %arg2: memref<32x32xf32, #tpu.memory_space<vmem>>, %arg3: memref<4x32xf32, #tpu.memory_space<vmem>>, %arg4: memref<8x1xf32, #tpu.memory_space<vmem>>) attributes {dimension_semantics = [#tpu.dimension_semantics<parallel>], iteration_bounds = array<i64: 1>, scalar_prefetch = 0 : i64, scratch_operands = 0 : i64, tpu.core_type = #tpu.core_type<tc>, window_params = [{transform_indices = @transform_0, window_bounds = array<i64: 8, 32>}, {pipeline_mode = #tpu.pipeline_mode<synchronous>, transform_indices = @transform_1, window_bounds = array<i64: 32, 32>}, {pipeline_mode = #tpu.pipeline_mode<synchronous>, transform_indices = @transform_2, window_bounds = array<i64: 4, 32>}, {transform_indices = @transform_3, window_bounds = array<i64: 8, 1>}]} {
    %c0 = arith.constant 0 : index
    %c0_0 = arith.constant 0 : index
    %0 = vector.load %arg1[%c0, %c0_0] : memref<8x32xf32, #tpu.memory_space<vmem>>, vector<8x32xf32>
    %c0_1 = arith.constant 0 : index
    %c0_2 = arith.constant 0 : index
    %1 = vector.load %arg2[%c0_1, %c0_2] : memref<32x32xf32, #tpu.memory_space<vmem>>, vector<32x32xf32>
    %c0_3 = arith.constant 0 : index
    %c0_4 = arith.constant 0 : index
    %2 = vector.load %arg3[%c0_3, %c0_4] : memref<4x32xf32, #tpu.memory_space<vmem>>, vector<1x32xf32>
    %c1 = arith.constant 1 : index
    %c0_5 = arith.constant 0 : index
    %3 = vector.load %arg3[%c1, %c0_5] : memref<4x32xf32, #tpu.memory_space<vmem>>, vector<1x32xf32>
    %c2 = arith.constant 2 : index
    %c0_6 = arith.constant 0 : index
    %4 = vector.load %arg3[%c2, %c0_6] : memref<4x32xf32, #tpu.memory_space<vmem>>, vector<1x32xf32>
    %c3 = arith.constant 3 : index
    %c0_7 = arith.constant 0 : index
    %5 = vector.load %arg3[%c3, %c0_7] : memref<4x32xf32, #tpu.memory_space<vmem>>, vector<1x32xf32>
    %cst = arith.constant dense<0.000000e+00> : vector<8x32xf32>
    %6 = tpu.matmul %0, %1, %cst {dimension_numbers = #tpu.dot_dimension_numbers<[1], [0], [0], [1], [0, 0, 1, 1], [], []>} : vector<8x32xf32>, vector<32x32xf32>, vector<8x32xf32> -> vector<8x32xf32>
    %7 = vector.broadcast %2 : vector<1x32xf32> to vector<8x32xf32>
    %8 = arith.addf %6, %7 : vector<8x32xf32>
    %9 = arith.mulf %8, %8 : vector<8x32xf32>
    %10 = arith.mulf %3, %3 : vector<1x32xf32>
    %11 = vector.broadcast %10 : vector<1x32xf32> to vector<8x32xf32>
    %12 = arith.addf %9, %11 : vector<8x32xf32>
    %13 = vector.broadcast %4 : vector<1x32xf32> to vector<8x32xf32>
    %14 = arith.mulf %8, %13 : vector<8x32xf32>
    %15 = arith.mulf %3, %5 : vector<1x32xf32>
    %16 = vector.broadcast %15 : vector<1x32xf32> to vector<8x32xf32>
    %17 = arith.addf %14, %16 : vector<8x32xf32>
    %18 = tpu.reciprocal %12 {approx = true} : vector<8x32xf32> -> vector<8x32xf32>
    %19 = arith.mulf %12, %18 : vector<8x32xf32>
    %cst_8 = arith.constant 2.000000e+00 : f32
    %20 = vector.broadcast %cst_8 : f32 to vector<8x32xf32>
    %21 = arith.subf %20, %19 : vector<8x32xf32>
    %22 = arith.mulf %18, %21 : vector<8x32xf32>
    %23 = arith.mulf %17, %22 : vector<8x32xf32>
    %cst_9 = arith.constant dense<0.000000e+00> : vector<8xf32>
    %24 = vector.multi_reduction <add>, %23, %cst_9 [1] : vector<8x32xf32> to vector<8xf32>
    %25 = vector.shape_cast %24 : vector<8xf32> to vector<8x1xf32>
    %cst_10 = arith.constant 3.200000e+01 : f32
    %26 = vector.broadcast %cst_10 : f32 to vector<8x1xf32>
    %27 = arith.divf %25, %26 : vector<8x1xf32>
    %c0_11 = arith.constant 0 : index
    %c0_12 = arith.constant 0 : index
    %28 = vector.load %arg4[%c0_11, %c0_12] : memref<8x1xf32, #tpu.memory_space<vmem>>, vector<8x1xf32>
    tpu.vector_store %arg4[%c0_11, %c0_12], %27 {strides = array<i32>} : memref<8x1xf32, #tpu.memory_space<vmem>>, vector<8x1xf32>,
    return
  }
  func.func @transform_0(%arg0: i32) -> (i32, i32) {
    %c0_i32 = arith.constant 0 : i32
    %c0_i32_0 = arith.constant 0 : i32
    return %arg0, %c0_i32 : i32, i32
  }
  func.func @transform_1(%arg0: i32) -> (i32, i32) {
    %c0_i32 = arith.constant 0 : i32
    %c0_i32_0 = arith.constant 0 : i32
    %c0_i32_1 = arith.constant 0 : i32
    return %c0_i32, %c0_i32_0 : i32, i32
  }
  func.func @transform_2(%arg0: i32) -> (i32, i32) {
    %c0_i32 = arith.constant 0 : i32
    %c0_i32_0 = arith.constant 0 : i32
    %c0_i32_1 = arith.constant 0 : i32
    return %c0_i32, %c0_i32_0 : i32, i32
  }
  func.func @transform_3(%arg0: i32) -> (i32, i32) {
    %c0_i32 = arith.constant 0 : i32
    %c0_i32_0 = arith.constant 0 : i32
    return %arg0, %c0_i32 : i32, i32
  }
}

</mosaic_0001>

<bundles_post_ra>
// kernel: tpu_custom_call.1
= control target key start
LH: loop header
LB: loop body
LE: loop exit
PB: predicated region body
PF: predicated region fallthrough
CT: control target
= control target key end

     0   :  { %8 = vsyncpa [#allocation3], 0  ;;  %s398_s0 = inlined_call_operand.hbm [shape: f32[8,32], index: 0, kind: input, shape index: {}]   ;;  %s399_s1 = inlined_call_operand.hbm [shape: f32[32,32], index: 1, kind: input, shape index: {}]   ;;  %s400_s2 = inlined_call_operand.vmem [shape: f32[4,32], index: 2, kind: input, shape index: {}]   ;;  %s401_s3 = inlined_call_operand.hbm [shape: f32[1,8], index: 3, kind: output, shape index: {}]  }
   0x1   :  { %9 = vsyncpa [#allocation6], 0 }
   0x2   :  { %10 = vsyncpa [#allocation4], 0  ;;  %s313_s12 = smov [#allocation2]   ;;  %s314_s14 = smov [#allocation5]  }
   0x3   :  { %s17_s13 = sshll.u32 %s313_s12, 4  ;;  %s26_s15 = sshll.u32 %s314_s14, 4  ;;  %s18_s13 = int_to_ptr.vmem [resolvable:$true] %s17_s13  ;;  %s341_s15 = int_to_ptr.vmem [resolvable:$true] %s26_s15 }
   0x4   :  { %s241_s18 = scalar_lea.hbm %s398_s0, 128 }
   0x5   :  { %p242_p0 = scmp.ne.s32.totalorder %s398_s0, %s241_s18  ;;  %p245_p1 = scmp.lt.u32.totalorder %s241_s18, %s398_s0 }
   0x7   :  { %p247_p2 = pnand %p245_p1, %p242_p0 }
   0x9   :  { %250 = shalt.err (!%p247_p2)
}
   0xa   :  { %s251_s23 = scalar_lea.vmem %s18_s13, 128  ;;  %p256_p4 = scmp.lt.s32.totalorder %s18_s13, %s18_s13 }
   0xb   :  { %p252_p3 = scmp.ne.s32.totalorder %s18_s13, %s251_s23  ;;  %p257_p5 = scmp.lt.s32.totalorder %s251_s23, %s251_s23 }
   0xd   :  { %p258_p6 = por %p257_p5, %p256_p4 }
   0xf   :  { %p259_p7 = pnand %p258_p6, %p252_p3 }
  0x11   :  { %262 = shalt.err (!%p259_p7)
}
  0x12   :  { %20 = dma.hbm_to_vmem [thread:$0]  %s398_s0, 128, %s18_s13, [#allocation3]  }
  0x13   :  { %s263_s28 = scalar_lea.hbm %s399_s1, 512 }
  0x14   :  { %p264_p8 = scmp.ne.s32.totalorder %s399_s1, %s263_s28  ;;  %p267_p9 = scmp.lt.u32.totalorder %s263_s28, %s399_s1 }
  0x16   :  { %p269_p10 = pnand %p267_p9, %p264_p8 }
  0x18   :  { %272 = shalt.err (!%p269_p10)
}
  0x19   :  { %s273_s6 = scalar_lea.vmem %s341_s15, 512  ;;  %p278_p12 = scmp.lt.s32.totalorder %s341_s15, %s341_s15 }
  0x1a   :  { %p274_p11 = scmp.ne.s32.totalorder %s341_s15, %s273_s6  ;;  %p279_p13 = scmp.lt.s32.totalorder %s273_s6, %s273_s6 }
  0x1c   :  { %p280_p0 = por %p279_p13, %p278_p12 }
  0x1e   :  { %p281_p1 = pnand %p280_p0, %p274_p11 }
  0x20   :  { %284 = shalt.err (!%p281_p1)
}
  0x21   :  { %s315_s0 = smov 128   ;;  %s316_s7 = smov 8  }
  0x22   :  { %32 = dma.hbm_to_vmem [thread:$0]  %s399_s1, 512, %s341_s15, [#allocation6], %s315_s0, %s315_s0, %s316_s7  }
  0x23   :  { %307 = dma.done.wait [#allocation3], 128  }
  0x24   :  { %308 = vsyncadd [#allocation3], 4294967168 }
  0x25   :  { %309 = dma.done.wait [#allocation6], 512  }
  0x26   :  { %310 = vsyncadd [#allocation6], 4294966784  ;;  %v317_v0 = vmov 0.0|0.0   ;;  %vm318_vm0 = vmmov 0   ;;  %v319_v1 = vmov 0.0   ;;  %v42_v2 = vld [vmem:[#allocation5] sm:$0xff]  ;;  %v130_v9 = vlaneseq }
  0x27   :  { %225 = vmatprep.subr.bf16.mxu0 %v317_v0  ;;  %222 = vmatprep.mubr.msk.f32.mxu0 %vm318_vm0, %v319_v1  ;;  %v43_v3 = vld [vmem:[#allocation5 + $0x8] sm:$0xff]  ;;  %v44_v4 = vld [vmem:[#allocation5 + $0x10] sm:$0xff]  ;;  %v45_v6 = vld [vmem:[#allocation5 + $0x18] sm:$0xff]  ;;  %vm54_vm1 = vcmask 261120   ;;  %s320_s17 = smov [#allocation7]   ;;  %vm188_vm2 = vcmask 57344  }
  0x28   :  { %v226_v5 = vpack.c.bf16 %v43_v3, %v42_v2  ;;  %v229_v7 = vpack.c.bf16 %v45_v6, %v44_v4  ;;  %v41_v8 = vld [vmem:[#allocation2] sm:$0xff]  ;;  %v131_v10 = vshrl.u32 %v130_v9, 7  ;;  %s196_s18 = sshll.u32 %s320_s17, 4  ;;  %s197_s18 = int_to_ptr.vmem [resolvable:$true] %s196_s18 }
  0x29   :  { %v47_v11 = vld [vmem:[%s400_s2 + $0x1] sm:$0x1]  ;;  %v206_v14 = vld [vmem:[%s400_s2] ss:$0 sm:$0xff]  ;;  %v49_v21 = vld [vmem:[%s400_s2 + $0x3] sm:$0x1]  ;;  %p290_p3 = scmp.lt.s32.totalorder %s197_s18, %s197_s18 }
  0x2a   :  { %227 = vmatpush3.bf16.msra.mxu0 %v226_v5  ;;  %v129_v12 = vmul.f32 %v47_v11, %v47_v11  ;;  %v132_v13 = vsub.s32 0, %v131_v10  ;;  %v140_v22 = vmul.f32 %v49_v21, %v47_v11  ;;  %v208_v23 = vld [vmem:[%s400_s2 + $0x2] ss:$0 sm:$0xff]  ;;  %s285_s2 = scalar_lea.vmem %s197_s18, 16  ;;  %s289_s19 = scalar_lea.vmem %s197_s18, 32 }
  0x2b   :  { %228 = vmatprep.subr.bf16.mxu0 %v317_v0  ;;  %p286_p2 = scmp.ne.s32.totalorder %s197_s18, %s285_s2  ;;  %p291_p4 = scmp.lt.s32.totalorder %s289_s19, %s285_s2 }
  0x2c   :  { %v133_v17 = vrot.slane %v129_v12, %v132_v13  ;;  %v144_v26 = vrot.slane %v140_v22, %v132_v13 }
  0x2d   :  { %p292_p5 = por %p291_p4, %p290_p3 }
  0x2e   :  { %230 = vmatpush3.bf16.msra.mxu0 %v229_v7 }
  0x2f   :  { %p293_p6 = pnand %p292_p5, %p286_p2 }
  0x31   :  { %223 = vmatmul.mubr.msk.f32.vlgmr.msra.gmra.mrb[0].mxu0 %vm54_vm1, %v41_v8 }
 0x104   :  { %v124_v15 = vpop.f32.mrb[0].mxu0 }
 0x105   :  { %v125_v16 = vadd.f32 %v206_v14, %v124_v15  ;;  %v224_v18 = vpop.f32.mrb[1].mxu0 }
 0x107   :  { %v128_v19 = vmul.f32 %v125_v16, %v125_v16  ;;  %v139_v25 = vmul.f32 %v208_v23, %v125_v16 }
 0x109   :  { %v134_v20 = vadd.f32 %v133_v17, %v128_v19  ;;  %v145_v29 = vadd.f32 %v144_v26, %v139_v25 }
 0x10b   :  { %239 = vrcp.f32 %v134_v20 }
 0x115   :  { %v240_v24 = vpop.eup %239 }
 0x116   :  { %v147_v27 = vmul.f32 %v240_v24, %v134_v20 }
 0x118   :  { %v148_v28 = vsub.f32 2.0, %v147_v27 }
 0x11a   :  { %v149_v30 = vmul.f32 %v240_v24, %v148_v28 }
 0x11c   :  { %v150_v31 = vmul.f32 %v149_v30, %v145_v29 }
 0x11e   :  { %v151_v32 = vsel %vm54_vm1, %v150_v31, 0.0 }
 0x11f   :  { %152 = vadd.xlane.f32.xlu0 %v151_v32 }
 0x1ac   :  { %v153_v33 = vpop.xlane.xlu0 %152 }
 0x1ad   :  { %v155_v34 = vmul.f32 0.03125, %v153_v33 }
 0x1af   :  { %156 = vxpose.xlu0.b32.start.end [1/1] (short) (narrow) %v155_v34, 8 }
 0x22f   :  { %v172_v35 = vpop.trf.xlu0 }
 0x230   :  { %189 = vst.msk [vmem:[#allocation7] sm:$0x1] %vm188_vm2, %v172_v35 }
 0x231   :  { %296 = shalt.err (!%p293_p6)
}
 0x232   :  { %s297_s22 = scalar_lea.hbm %s401_s3, 16 }
 0x233   :  { %p298_p7 = scmp.ne.s32.totalorder %s401_s3, %s297_s22  ;;  %p301_p8 = scmp.lt.u32.totalorder %s297_s22, %s401_s3 }
 0x235   :  { %p303_p9 = pnand %p301_p8, %p298_p7 }
 0x237   :  { %306 = shalt.err (!%p303_p9)
}
 0x238   :  { %199 = dma.vmem_to_hbm [thread:$0]  %s197_s18, 16, %s401_s3, [#allocation4]  }
 0x239   :  { %311 = dma.done.wait [#allocation4], 16  }
 0x23a   :  { %312 = vsyncadd [#allocation4], 4294967280 }
 0x23b   :  { %203 = vsyncpa [#allocation3], 1 }
 0x23c   :  { %204 = vsyncpa [#allocation6], 1 }
 0x23d   :  { %205 = vsyncpa [#allocation4], 1 }

// kernel: tpu_custom_call.1
= control target key start
LH: loop header
LB: loop body
LE: loop exit
PB: predicated region body
PF: predicated region fallthrough
CT: control target
= control target key end

     0   :  { %8 = vsyncpa [#allocation3], 0  ;;  %s398_s0 = inlined_call_operand.hbm [shape: f32[8,32], index: 0, kind: input, shape index: {}]   ;;  %s399_s1 = inlined_call_operand.hbm [shape: f32[32,32], index: 1, kind: input, shape index: {}]   ;;  %s400_s2 = inlined_call_operand.vmem [shape: f32[4,32], index: 2, kind: input, shape index: {}]   ;;  %s401_s3 = inlined_call_operand.hbm [shape: f32[1,8], index: 3, kind: output, shape index: {}]  }
   0x1   :  { %9 = vsyncpa [#allocation6], 0 }
   0x2   :  { %10 = vsyncpa [#allocation4], 0  ;;  %s313_s12 = smov [#allocation2]   ;;  %s314_s14 = smov [#allocation5]  }
   0x3   :  { %s17_s13 = sshll.u32 %s313_s12, 4  ;;  %s26_s15 = sshll.u32 %s314_s14, 4  ;;  %s18_s13 = int_to_ptr.vmem [resolvable:$true] %s17_s13  ;;  %s341_s15 = int_to_ptr.vmem [resolvable:$true] %s26_s15 }
   0x4   :  { %s241_s18 = scalar_lea.hbm %s398_s0, 128 }
   0x5   :  { %p242_p0 = scmp.ne.s32.totalorder %s398_s0, %s241_s18  ;;  %p245_p1 = scmp.lt.u32.totalorder %s241_s18, %s398_s0 }
   0x7   :  { %p247_p2 = pnand %p245_p1, %p242_p0 }
   0x9   :  { %250 = shalt.err (!%p247_p2)
}
   0xa   :  { %s251_s23 = scalar_lea.vmem %s18_s13, 128  ;;  %p256_p4 = scmp.lt.s32.totalorder %s18_s13, %s18_s13 }
   0xb   :  { %p252_p3 = scmp.ne.s32.totalorder %s18_s13, %s251_s23  ;;  %p257_p5 = scmp.lt.s32.totalorder %s251_s23, %s251_s23 }
   0xd   :  { %p258_p6 = por %p257_p5, %p256_p4 }
   0xf   :  { %p259_p7 = pnand %p258_p6, %p252_p3 }
  0x11   :  { %262 = shalt.err (!%p259_p7)
}
  0x12   :  { %20 = dma.hbm_to_vmem [thread:$0]  %s398_s0, 128, %s18_s13, [#allocation3]  }
  0x13   :  { %s263_s28 = scalar_lea.hbm %s399_s1, 512 }
  0x14   :  { %p264_p8 = scmp.ne.s32.totalorder %s399_s1, %s263_s28  ;;  %p267_p9 = scmp.lt.u32.totalorder %s263_s28, %s399_s1 }
  0x16   :  { %p269_p10 = pnand %p267_p9, %p264_p8 }
  0x18   :  { %272 = shalt.err (!%p269_p10)
}
  0x19   :  { %s273_s6 = scalar_lea.vmem %s341_s15, 512  ;;  %p278_p12 = scmp.lt.s32.totalorder %s341_s15, %s341_s15 }
  0x1a   :  { %p274_p11 = scmp.ne.s32.totalorder %s341_s15, %s273_s6  ;;  %p279_p13 = scmp.lt.s32.totalorder %s273_s6, %s273_s6 }
  0x1c   :  { %p280_p0 = por %p279_p13, %p278_p12 }
  0x1e   :  { %p281_p1 = pnand %p280_p0, %p274_p11 }
  0x20   :  { %284 = shalt.err (!%p281_p1)
}
  0x21   :  { %s315_s0 = smov 128   ;;  %s316_s7 = smov 8  }
  0x22   :  { %32 = dma.hbm_to_vmem [thread:$0]  %s399_s1, 512, %s341_s15, [#allocation6], %s315_s0, %s315_s0, %s316_s7  }
  0x23   :  { %307 = dma.done.wait [#allocation3], 128  }
  0x24   :  { %308 = vsyncadd [#allocation3], 4294967168 }
  0x25   :  { %309 = dma.done.wait [#allocation6], 512  }
  0x26   :  { %310 = vsyncadd [#allocation6], 4294966784  ;;  %v317_v0 = vmov 0.0|0.0   ;;  %vm318_vm0 = vmmov 0   ;;  %v319_v1 = vmov 0.0   ;;  %v42_v2 = vld [vmem:[#allocation5] sm:$0xff]  ;;  %v130_v9 = vlaneseq }
  0x27   :  { %225 = vmatprep.subr.bf16.mxu0 %v317_v0  ;;  %222 = vmatprep.mubr.msk.f32.mxu0 %vm318_vm0, %v319_v1  ;;  %v43_v3 = vld [vmem:[#allocation5 + $0x8] sm:$0xff]  ;;  %v44_v4 = vld [vmem:[#allocation5 + $0x10] sm:$0xff]  ;;  %v45_v6 = vld [vmem:[#allocation5 + $0x18] sm:$0xff]  ;;  %vm54_vm1 = vcmask 261120   ;;  %s320_s17 = smov [#allocation7]   ;;  %vm188_vm2 = vcmask 57344  }
  0x28   :  { %v226_v5 = vpack.c.bf16 %v43_v3, %v42_v2  ;;  %v229_v7 = vpack.c.bf16 %v45_v6, %v44_v4  ;;  %v41_v8 = vld [vmem:[#allocation2] sm:$0xff]  ;;  %v131_v10 = vshrl.u32 %v130_v9, 7  ;;  %s196_s18 = sshll.u32 %s320_s17, 4  ;;  %s197_s18 = int_to_ptr.vmem [resolvable:$true] %s196_s18 }
  0x29   :  { %v47_v11 = vld [vmem:[%s400_s2 + $0x1] sm:$0x1]  ;;  %v206_v14 = vld [vmem:[%s400_s2] ss:$0 sm:$0xff]  ;;  %v49_v21 = vld [vmem:[%s400_s2 + $0x3] sm:$0x1]  ;;  %p290_p3 = scmp.lt.s32.totalorder %s197_s18, %s197_s18 }
  0x2a   :  { %227 = vmatpush3.bf16.msra.mxu0 %v226_v5  ;;  %v129_v12 = vmul.f32 %v47_v11, %v47_v11  ;;  %v132_v13 = vsub.s32 0, %v131_v10  ;;  %v140_v22 = vmul.f32 %v49_v21, %v47_v11  ;;  %v208_v23 = vld [vmem:[%s400_s2 + $0x2] ss:$0 sm:$0xff]  ;;  %s285_s2 = scalar_lea.vmem %s197_s18, 16  ;;  %s289_s19 = scalar_lea.vmem %s197_s18, 32 }
  0x2b   :  { %228 = vmatprep.subr.bf16.mxu0 %v317_v0  ;;  %p286_p2 = scmp.ne.s32.totalorder %s197_s18, %s285_s2  ;;  %p291_p4 = scmp.lt.s32.totalorder %s289_s19, %s285_s2 }
  0x2c   :  { %v133_v17 = vrot.slane %v129_v12, %v132_v13  ;;  %v144_v26 = vrot.slane %v140_v22, %v132_v13 }
  0x2d   :  { %p292_p5 = por %p291_p4, %p290_p3 }
  0x2e   :  { %230 = vmatpush3.bf16.msra.mxu0 %v229_v7 }
  0x2f   :  { %p293_p6 = pnand %p292_p5, %p286_p2 }
  0x31   :  { %223 = vmatmul.mubr.msk.f32.vlgmr.msra.gmra.mrb[0].mxu0 %vm54_vm1, %v41_v8 }
 0x104   :  { %v124_v15 = vpop.f32.mrb[0].mxu0 }
 0x105   :  { %v125_v16 = vadd.f32 %v206_v14, %v124_v15  ;;  %v224_v18 = vpop.f32.mrb[1].mxu0 }
 0x107   :  { %v128_v19 = vmul.f32 %v125_v16, %v125_v16  ;;  %v139_v25 = vmul.f32 %v208_v23, %v125_v16 }
 0x109   :  { %v134_v20 = vadd.f32 %v133_v17, %v128_v19  ;;  %v145_v29 = vadd.f32 %v144_v26, %v139_v25 }
 0x10b   :  { %239 = vrcp.f32 %v134_v20 }
 0x115   :  { %v240_v24 = vpop.eup %239 }
 0x116   :  { %v147_v27 = vmul.f32 %v240_v24, %v134_v20 }
 0x118   :  { %v148_v28 = vsub.f32 2.0, %v147_v27 }
 0x11a   :  { %v149_v30 = vmul.f32 %v240_v24, %v148_v28 }
 0x11c   :  { %v150_v31 = vmul.f32 %v149_v30, %v145_v29 }
 0x11e   :  { %v151_v32 = vsel %vm54_vm1, %v150_v31, 0.0 }
 0x11f   :  { %152 = vadd.xlane.f32.xlu0 %v151_v32 }
 0x1ac   :  { %v153_v33 = vpop.xlane.xlu0 %152 }
 0x1ad   :  { %v155_v34 = vmul.f32 0.03125, %v153_v33 }
 0x1af   :  { %156 = vxpose.xlu0.b32.start.end [1/1] (short) (narrow) %v155_v34, 8 }
 0x22f   :  { %v172_v35 = vpop.trf.xlu0 }
 0x230   :  { %189 = vst.msk [vmem:[#allocation7] sm:$0x1] %vm188_vm2, %v172_v35 }
 0x231   :  { %296 = shalt.err (!%p293_p6)
}
 0x232   :  { %s297_s22 = scalar_lea.hbm %s401_s3, 16 }
 0x233   :  { %p298_p7 = scmp.ne.s32.totalorder %s401_s3, %s297_s22  ;;  %p301_p8 = scmp.lt.u32.totalorder %s297_s22, %s401_s3 }
 0x235   :  { %p303_p9 = pnand %p301_p8, %p298_p7 }
 0x237   :  { %306 = shalt.err (!%p303_p9)
}
 0x238   :  { %199 = dma.vmem_to_hbm [thread:$0]  %s197_s18, 16, %s401_s3, [#allocation4]  }
 0x239   :  { %311 = dma.done.wait [#allocation4], 16  }
 0x23a   :  { %312 = vsyncadd [#allocation4], 4294967280 }
 0x23b   :  { %203 = vsyncpa [#allocation3], 1 }
 0x23c   :  { %204 = vsyncpa [#allocation6], 1 }
 0x23d   :  { %205 = vsyncpa [#allocation4], 1 }

// kernel: tpu_custom_call.1
= control target key start
LH: loop header
LB: loop body
LE: loop exit
PB: predicated region body
PF: predicated region fallthrough
CT: control target
= control target key end

     0   :  { %8 = vsyncpa [#allocation3], 0  ;;  %s320_s0 = inlined_call_operand.hbm [shape: f32[8,32], index: 0, kind: input, shape index: {}]   ;;  %s321_s1 = inlined_call_operand.hbm [shape: f32[32,32], index: 1, kind: input, shape index: {}]   ;;  %s322_s2 = inlined_call_operand.vmem [shape: f32[4,32], index: 2, kind: input, shape index: {}]   ;;  %s323_s3 = inlined_call_operand.vmem [shape: f32[8,1], index: 3, kind: output, shape index: {}]  }
   0x1   :  { %9 = vsyncpa [#allocation5], 0  ;;  %s245_s12 = smov [#allocation2]   ;;  %s246_s14 = smov [#allocation4]  }
   0x2   :  { %s16_s13 = sshll.u32 %s245_s12, 4  ;;  %s25_s15 = sshll.u32 %s246_s14, 4  ;;  %s17_s13 = int_to_ptr.vmem [resolvable:$true] %s16_s13  ;;  %s272_s15 = int_to_ptr.vmem [resolvable:$true] %s25_s15 }
   0x3   :  { %s197_s18 = scalar_lea.hbm %s320_s0, 128 }
   0x4   :  { %p198_p0 = scmp.ne.s32.totalorder %s320_s0, %s197_s18  ;;  %p201_p1 = scmp.lt.u32.totalorder %s197_s18, %s320_s0 }
   0x6   :  { %p203_p2 = pnand %p201_p1, %p198_p0 }
   0x8   :  { %206 = shalt.err (!%p203_p2)
}
   0x9   :  { %s207_s23 = scalar_lea.vmem %s17_s13, 128  ;;  %p212_p4 = scmp.lt.s32.totalorder %s17_s13, %s17_s13 }
   0xa   :  { %p208_p3 = scmp.ne.s32.totalorder %s17_s13, %s207_s23  ;;  %p213_p5 = scmp.lt.s32.totalorder %s207_s23, %s207_s23 }
   0xc   :  { %p214_p6 = por %p213_p5, %p212_p4 }
   0xe   :  { %p215_p7 = pnand %p214_p6, %p208_p3 }
  0x10   :  { %218 = shalt.err (!%p215_p7)
}
  0x11   :  { %19 = dma.hbm_to_vmem [thread:$0]  %s320_s0, 128, %s17_s13, [#allocation3]  }
  0x12   :  { %s219_s28 = scalar_lea.hbm %s321_s1, 512 }
  0x13   :  { %p220_p8 = scmp.ne.s32.totalorder %s321_s1, %s219_s28  ;;  %p223_p9 = scmp.lt.u32.totalorder %s219_s28, %s321_s1 }
  0x15   :  { %p225_p10 = pnand %p223_p9, %p220_p8 }
  0x17   :  { %228 = shalt.err (!%p225_p10)
}
  0x18   :  { %s229_s6 = scalar_lea.vmem %s272_s15, 512  ;;  %p234_p12 = scmp.lt.s32.totalorder %s272_s15, %s272_s15 }
  0x19   :  { %p230_p11 = scmp.ne.s32.totalorder %s272_s15, %s229_s6  ;;  %p235_p13 = scmp.lt.s32.totalorder %s229_s6, %s229_s6 }
  0x1b   :  { %p236_p0 = por %p235_p13, %p234_p12 }
  0x1d   :  { %p237_p1 = pnand %p236_p0, %p230_p11 }
  0x1f   :  { %240 = shalt.err (!%p237_p1)
}
  0x20   :  { %s247_s0 = smov 128   ;;  %s248_s7 = smov 8  }
  0x21   :  { %31 = dma.hbm_to_vmem [thread:$0]  %s321_s1, 512, %s272_s15, [#allocation5], %s247_s0, %s247_s0, %s248_s7  }
  0x22   :  { %241 = dma.done.wait [#allocation3], 128  }
  0x23   :  { %242 = vsyncadd [#allocation3], 4294967168 }
  0x24   :  { %243 = dma.done.wait [#allocation5], 512  }
  0x25   :  { %244 = vsyncadd [#allocation5], 4294966784  ;;  %v249_v0 = vmov 0.0|0.0   ;;  %vm250_vm0 = vmmov 0   ;;  %v251_v1 = vmov 0.0   ;;  %v41_v2 = vld [vmem:[#allocation4] sm:$0xff]  ;;  %v129_v9 = vlaneseq }
  0x26   :  { %182 = vmatprep.subr.bf16.mxu0 %v249_v0  ;;  %179 = vmatprep.mubr.msk.f32.mxu0 %vm250_vm0, %v251_v1  ;;  %v42_v3 = vld [vmem:[#allocation4 + $0x8] sm:$0xff]  ;;  %v43_v4 = vld [vmem:[#allocation4 + $0x10] sm:$0xff]  ;;  %v44_v6 = vld [vmem:[#allocation4 + $0x18] sm:$0xff]  ;;  %vm53_vm1 = vcmask 261120   ;;  %vm155_vm2 = vcmask 7168  }
  0x27   :  { %v183_v5 = vpack.c.bf16 %v42_v3, %v41_v2  ;;  %v186_v7 = vpack.c.bf16 %v44_v6, %v43_v4  ;;  %v40_v8 = vld [vmem:[#allocation2] sm:$0xff]  ;;  %v130_v10 = vshrl.u32 %v129_v9, 7  ;;  %v46_v11 = vld [vmem:[%s322_s2 + $0x1] sm:$0x1]  ;;  %v163_v14 = vld [vmem:[%s322_s2] ss:$0 sm:$0xff] }
  0x28   :  { %v128_v12 = vmul.f32 %v46_v11, %v46_v11  ;;  %v48_v21 = vld [vmem:[%s322_s2 + $0x3] sm:$0x1]  ;;  %v165_v23 = vld [vmem:[%s322_s2 + $0x2] ss:$0 sm:$0xff] }
  0x29   :  { %184 = vmatpush3.bf16.msra.mxu0 %v183_v5  ;;  %v131_v13 = vsub.s32 0, %v130_v10  ;;  %v139_v22 = vmul.f32 %v48_v21, %v46_v11 }
  0x2a   :  { %185 = vmatprep.subr.bf16.mxu0 %v249_v0 }
  0x2b   :  { %v132_v17 = vrot.slane %v128_v12, %v131_v13  ;;  %v143_v26 = vrot.slane %v139_v22, %v131_v13 }
  0x2d   :  { %187 = vmatpush3.bf16.msra.mxu0 %v186_v7 }
  0x30   :  { %180 = vmatmul.mubr.msk.f32.vlgmr.msra.gmra.mrb[0].mxu0 %vm53_vm1, %v40_v8 }
 0x103   :  { %v123_v15 = vpop.f32.mrb[0].mxu0 }
 0x104   :  { %v124_v16 = vadd.f32 %v163_v14, %v123_v15  ;;  %v181_v18 = vpop.f32.mrb[1].mxu0 }
 0x106   :  { %v127_v19 = vmul.f32 %v124_v16, %v124_v16  ;;  %v138_v25 = vmul.f32 %v165_v23, %v124_v16 }
 0x108   :  { %v133_v20 = vadd.f32 %v132_v17, %v127_v19  ;;  %v144_v29 = vadd.f32 %v143_v26, %v138_v25 }
 0x10a   :  { %195 = vrcp.f32 %v133_v20 }
 0x114   :  { %v196_v24 = vpop.eup %195 }
 0x115   :  { %v146_v27 = vmul.f32 %v196_v24, %v133_v20 }
 0x117   :  { %v147_v28 = vsub.f32 2.0, %v146_v27 }
 0x119   :  { %v148_v30 = vmul.f32 %v196_v24, %v147_v28 }
 0x11b   :  { %v149_v31 = vmul.f32 %v148_v30, %v144_v29 }
 0x11d   :  { %v150_v32 = vsel %vm53_vm1, %v149_v31, 0.0 }
 0x11e   :  { %151 = vadd.xlane.f32.xlu0 %v150_v32 }
 0x1ab   :  { %v152_v33 = vpop.xlane.xlu0 %151 }
 0x1ac   :  { %v154_v34 = vmul.f32 0.03125, %v152_v33 }
 0x1ae   :  { %156 = vst.msk [vmem:[%s323_s3] sm:$0xff] %vm155_vm2, %v154_v34 }
 0x1af   :  { %161 = vsyncpa [#allocation3], 1 }
 0x1b0   :  { %162 = vsyncpa [#allocation5], 1 }

</bundles_post_ra>
